<compile_context>
chip_gen: v7x
topology: tpu7x:2x2x1
jax: 0.10.0
libtpu: 0.0.40
codegen_flags: <defaults>
</compile_context>

<pallas_src>
import numpy as np
import jax
import jax.numpy as jnp
from jax import lax
from jax.experimental import pallas as pl
from jax.experimental.pallas import tpu as pltpu

LANE = 128                 # lanes per vreg
SUB = 8                    # f32 sublanes per vreg
ROW_BLOCK = SUB * LANE     # 1024 elements = one full (8, 128) f32 vreg


def _cdiv(a, b):
    return -(-a // b)


def _device_kind():
    try:
        return jax.devices()[0].device_kind.lower()
    except Exception:
        return ""


def _vmem_budget():
    """Physical VMEM capacity with ~25% headroom (Mosaic scratch, dbl-buffers)."""
    try:
        cap = int(pltpu.get_tpu_info().vmem_capacity_bytes)
    except Exception:
        cap = 64 << 20          # conservative (v7x per-TC) fallback
    return (cap * 3) // 4


def _make_loss_kernel(b, r_blk, tiles_per_part, valid_rows, exact_cover, approx_recip):
    """Kernel over (b, r_blk, 128) logit/target tiles.

    acc_ref (VMEM scratch, (4, 8*b, 128)) holds lane-wide partial sums of
      q=0: sigmoid(x)*t   q=1: sigmoid(x)   q=2: t   q=3: bce (logits form)
    and is flushed to out_ref once per partition (last j step).
    """

    def fold(v):
        # (b, r_blk, 128) -> (8*b, 128): sum only across whole vregs (pure VPU
        # adds); the cross-lane / cross-sublane reduction is deferred to the
        # tiny wrapper epilogue.
        return jnp.sum(v.reshape(b, r_blk // SUB, SUB, LANE), axis=1).reshape(b * SUB, LANE)

    def kernel(x_ref, t_ref, out_ref, acc_ref):
        j = pl.program_id(1)

        @pl.when(j == 0)
        def _():
            acc_ref[...] = jnp.zeros_like(acc_ref)

        x = x_ref[...].astype(jnp.float32)
        t = t_ref[...].astype(jnp.float32)

        def accumulate(xv, tv):
            # Logits-form sigmoid / BCE: exp, log, reciprocal (3 EUP-class ops)
            # plus ~10 cheap VPU ops per element.
            e = jnp.exp(-jnp.abs(xv))                      # exp(-|x|) in (0, 1]
            one_plus_e = 1.0 + e
            if approx_recip:                               # EUP vrcp (v7x)
                inv = pl.reciprocal(one_plus_e, approx=True)
            else:
                inv = 1.0 / one_plus_e
            prob = jnp.where(xv >= 0.0, inv, e * inv)      # sigmoid(x)
            # bce = softplus(x) - x*t  ==  -(t*log(p) + (1-t)*log(1-p))
            bce = jnp.maximum(xv, 0.0) + jnp.log(one_plus_e) - xv * tv

            acc_ref[0] += fold(prob * tv)
            acc_ref[1] += fold(prob)
            acc_ref[2] += fold(tv)
            acc_ref[3] += fold(bce)

        if exact_cover:
            accumulate(x, t)
        else:
            p_id = pl.program_id(0)
            row0 = (p_id * tiles_per_part + j) * r_blk
            needs_mask = row0 + r_blk > valid_rows

            @pl.when(jnp.logical_not(needs_mask))
            def _():
                accumulate(x, t)

            @pl.when(needs_mask)
            def _():
                # Partial / duplicated boundary tile: zero the contribution of
                # rows past the true row count (their VMEM content is
                # undefined).  x=-1e30 -> sigmoid=0, bce=0 ; t=0.
                rows = row0 + lax.broadcasted_iota(jnp.int32, (b, r_blk, LANE), 1)
                m = rows < valid_rows
                accumulate(jnp.where(m, x, -1e30), jnp.where(m, t, 0.0))

        @pl.when(j == tiles_per_part - 1)
        def _():
            out_ref[0] = acc_ref[...]

    return kernel


def batch_binary_mask_loss(inputs, targets, *, weight=0.8, alpha=0.8, gamma=2,
                           smooth=1e-6, block_bytes=2 << 20, tile_n=None,
                           n_parallel=None, approx_recip=None, stream_bf16=False):
    """inputs/targets: (B, C, H, W) float arrays.  Returns the scalar loss."""
    b = inputs.shape[0]
    x = jnp.reshape(inputs, (b, -1))
    t = jnp.reshape(targets, (b, -1))
    n = x.shape[1]

    if stream_bf16:
        # Optional v5e/v6e HBM saver (targets exact for {0,1} masks; logits
        # lose ~1e-3 relative).  All math stays f32 in-kernel.
        x = x.astype(jnp.bfloat16)
        t = t.astype(jnp.bfloat16)

    kind = _device_kind()
    two_cores = ("v7" in kind) or ("7x" in kind)
    if n_parallel is None:
        n_parallel = 2 if two_cores else 1      # 2 TensorCores only on v7x
    if approx_recip is None:
        approx_recip = two_cores                # EUP is the binding slot on v7x

    # Structural pad only up to the lane/vreg quantum (no-op when N is already
    # 128-aligned, the common case for real mask shapes).  Padded elements
    # contribute exactly zero: x=-1e9 -> sigmoid=0, bce=0 ; t=0.
    # TODO(synk): the N % 128 remainder still needs this (cheap) wrapper pad; an
    # in-kernel lane mask could remove even this copy.
    n_struct = max(_cdiv(n, LANE) * LANE, ROW_BLOCK)
    if n_struct != n:
        pad = n_struct - n
        x = jnp.pad(x, ((0, 0), (0, pad)), constant_values=-1e9)
        t = jnp.pad(t, ((0, 0), (0, pad)), constant_values=0.0)

    r = n_struct // LANE                        # 128-lane rows per batch element
    x3 = x.reshape(b, r, LANE)
    t3 = t.reshape(b, r, LANE)

    # ---- block sizing: by bytes, vreg-row aligned, clamped to the VMEM budget.
    budget = _vmem_budget()
    max_rows = (r // SUB) * SUB                 # largest vreg-aligned block <= r
    if tile_n is None:
        rows = int(block_bytes) // (b * x3.dtype.itemsize * LANE)
    else:
        rows = int(tile_n) // LANE
    rows = max(SUB, (rows // SUB) * SUB)
    rows = min(rows, max_rows)
    per_row_bytes = 2 * b * LANE * (x3.dtype.itemsize + t3.dtype.itemsize)  # dbl-buffered
    rows_vmem = max(SUB, ((budget - (6 << 20)) // per_row_bytes // SUB) * SUB)
    r_blk = min(rows, rows_vmem)
    tile_n = r_blk * LANE

    t_blocks = _cdiv(r, r_blk)
    n_parallel = max(1, min(int(n_parallel), t_blocks))
    tiles_per_part = _cdiv(t_blocks, n_parallel)
    exact_cover = (r % r_blk == 0) and (t_blocks % n_parallel == 0)

    if exact_cover:
        in_map = lambda p, j: (0, p * tiles_per_part + j, 0)
    else:
        last = t_blocks - 1
        in_map = lambda p, j: (0, jnp.minimum(p * tiles_per_part + j, last), 0)
    out_map = lambda p, j: (p, 0, 0, 0)

    acc_bytes = 4 * b * SUB * LANE * 4
    vmem_need = (2 * b * tile_n * (x3.dtype.itemsize + t3.dtype.itemsize)
                 + 3 * acc_bytes + (4 << 20))
    vmem_limit = int(min(budget, max(32 << 20, vmem_need)))

    kernel = _make_loss_kernel(b, r_blk, tiles_per_part, r, exact_cover, approx_recip)

    partials = pl.pallas_call(
        kernel,
        out_shape=jax.ShapeDtypeStruct((n_parallel, 4, b * SUB, LANE), jnp.float32),
        grid_spec=pltpu.PrefetchScalarGridSpec(
            num_scalar_prefetch=0,
            grid=(n_parallel, tiles_per_part),
            in_specs=[pl.BlockSpec((b, r_blk, LANE), in_map),
                      pl.BlockSpec((b, r_blk, LANE), in_map)],
            out_specs=pl.BlockSpec((1, 4, b * SUB, LANE), out_map),
            scratch_shapes=[pltpu.VMEM((4, b * SUB, LANE), jnp.float32)],
        ),
        compiler_params=pltpu.CompilerParams(
            dimension_semantics=("parallel", "arbitrary"),
            vmem_limit_bytes=vmem_limit),
    )(x3, t3)

    # Tiny epilogue: single cross-lane/sublane reduce + dice/focal combine.
    sums = partials.sum(axis=(0, 3)).reshape(4, b, SUB).sum(axis=-1)       # (4, B)
    inter, s_p, s_t, s_bce = sums[0], sums[1], sums[2], sums[3]

    dice = (2.0 * inter + smooth) / (s_p + s_t + smooth)
    dice_loss = jnp.mean(1.0 - dice)

    bce_mean = s_bce / n                         # true (unpadded) element count
    focal = alpha * (1.0 - jnp.exp(-bce_mean)) ** gamma * bce_mean
    focal_loss = jnp.mean(focal)

    return weight * dice_loss + (1.0 - weight) * focal_loss


def _reference_loss(inputs, targets, weight=0.8, alpha=0.8, gamma=2, smooth=1e-6):
    """Pure-JAX reference matching the PyTorch module literally."""
    b = inputs.shape[0]
    p = jax.nn.sigmoid(inputs.astype(jnp.float32)).reshape(b, -1)
    t = targets.astype(jnp.float32).reshape(b, -1)
    inter = jnp.sum(p * t, axis=1)
    dice = (2.0 * inter + smooth) / (jnp.sum(p, axis=1) + jnp.sum(t, axis=1) + smooth)
    dice_loss = jnp.mean(1.0 - dice)
    log_p = jnp.maximum(jnp.log(p), -100.0)
    log_1mp = jnp.maximum(jnp.log(1.0 - p), -100.0)
    bce = -(t * log_p + (1.0 - t) * log_1mp)
    bce_mean = jnp.mean(bce, axis=1)
    focal = alpha * (1.0 - jnp.exp(-bce_mean)) ** gamma * bce_mean
    focal_loss = jnp.mean(focal)
    return weight * dice_loss + (1.0 - weight) * focal_loss


if __name__ == "__main__":
    key = jax.random.PRNGKey(0)
    k1, k2, k3, k4, k5, k6 = jax.random.split(key, 6)

    # Case 1: (B, C, H, W) = (2, 4, 16, 16) -> N = 1024, single exact tile.
    x1 = jax.random.normal(k1, (2, 4, 16, 16), dtype=jnp.float32)
    t1 = jax.random.bernoulli(k2, 0.5, (2, 4, 16, 16)).astype(jnp.float32)
    loss1 = jax.block_until_ready(batch_binary_mask_loss(x1, t1))
    ref1 = jax.block_until_ready(_reference_loss(x1, t1))
    np.testing.assert_allclose(np.asarray(loss1), np.asarray(ref1),
                               rtol=1e-3, atol=1e-5)

    # Case 2: N = 4500 (not 128-aligned), small tiles -> exercises the lane
    # pad, the in-kernel boundary-row mask and multi-tile accumulation.
    x2 = jax.random.normal(k3, (2, 5, 30, 30), dtype=jnp.float32)
    t2 = jax.random.bernoulli(k4, 0.3, (2, 5, 30, 30)).astype(jnp.float32)
    loss2 = jax.block_until_ready(batch_binary_mask_loss(x2, t2, tile_n=2048))
    ref2 = jax.block_until_ready(_reference_loss(x2, t2))
    np.testing.assert_allclose(np.asarray(loss2), np.asarray(ref2),
                               rtol=1e-3, atol=1e-5)

    # Case 3: N = 16384 (128-aligned, no pad), 4 tiles -> exercises the
    # unmasked multi-tile path and the (possibly parallel) partition axis.
    xa = jax.random.normal(k5, (2, 4, 64, 64), dtype=jnp.float32)
    ta = jax.random.bernoulli(k6, 0.4, (2, 4, 64, 64)).astype(jnp.float32)
    loss3 = jax.block_until_ready(batch_binary_mask_loss(xa, ta, tile_n=4096))
    ref3 = jax.block_until_ready(_reference_loss(xa, ta))
    np.testing.assert_allclose(np.asarray(loss3), np.asarray(ref3),
                               rtol=1e-3, atol=1e-5)

    print("KERNEL_OK")
</pallas_src>

<mosaic_0001>
module attributes {stable_mosaic.version = 11 : i64} {
  func.func @kernel(%arg0: i32, %arg1: i32, %arg2: memref<2x8x128xf32, #tpu.memory_space<vmem>>, %arg3: memref<2x8x128xf32, #tpu.memory_space<vmem>>, %arg4: memref<1x4x16x128xf32, #tpu.memory_space<vmem>>, %arg5: memref<4x16x128xf32, #tpu.memory_space<vmem>>) attributes {dimension_semantics = [#tpu.dimension_semantics<parallel>, #tpu.dimension_semantics<arbitrary>], iteration_bounds = array<i64: 1, 1>, scalar_prefetch = 0 : i64, scratch_operands = 1 : i64, tpu.core_type = #tpu.core_type<tc>, window_params = [{transform_indices = @transform_0, window_bounds = array<i64: 2, 8, 128>}, {transform_indices = @transform_1, window_bounds = array<i64: 2, 8, 128>}, {transform_indices = @transform_2, window_bounds = array<i64: 1, 4, 16, 128>}]} {
    %c0_i32 = arith.constant 0 : i32
    %0 = arith.cmpi eq, %arg1, %c0_i32 : i32
    %1 = arith.extui %0 : i1 to i32
    %c0_i32_0 = arith.constant 0 : i32
    %2 = arith.cmpi ne, %1, %c0_i32_0 : i32
    scf.if %2 {
      %cst_37 = arith.constant 0.000000e+00 : f32
      %63 = vector.broadcast %cst_37 : f32 to vector<4x16x128xf32>
      %c0_38 = arith.constant 0 : index
      %c0_39 = arith.constant 0 : index
      %c0_40 = arith.constant 0 : index
      %64 = vector.load %arg5[%c0_38, %c0_39, %c0_40] : memref<4x16x128xf32, #tpu.memory_space<vmem>>, vector<4x16x128xf32>
      tpu.vector_store %arg5[%c0_38, %c0_39, %c0_40], %63 {strides = array<i32>} : memref<4x16x128xf32, #tpu.memory_space<vmem>>, vector<4x16x128xf32>,
    } else {
    }
    %c0 = arith.constant 0 : index
    %c0_1 = arith.constant 0 : index
    %c0_2 = arith.constant 0 : index
    %3 = vector.load %arg2[%c0, %c0_1, %c0_2] : memref<2x8x128xf32, #tpu.memory_space<vmem>>, vector<2x8x128xf32>
    %c0_3 = arith.constant 0 : index
    %c0_4 = arith.constant 0 : index
    %c0_5 = arith.constant 0 : index
    %4 = vector.load %arg3[%c0_3, %c0_4, %c0_5] : memref<2x8x128xf32, #tpu.memory_space<vmem>>, vector<2x8x128xf32>
    %5 = math.absf %3 : vector<2x8x128xf32>
    %cst = arith.constant 0.000000e+00 : f32
    %6 = vector.broadcast %cst : f32 to vector<2x8x128xf32>
    %7 = arith.subf %6, %5 : vector<2x8x128xf32>
    %8 = math.exp %7 : vector<2x8x128xf32>
    %cst_6 = arith.constant 1.000000e+00 : f32
    %9 = vector.broadcast %cst_6 : f32 to vector<2x8x128xf32>
    %10 = arith.addf %9, %8 : vector<2x8x128xf32>
    %cst_7 = arith.constant 1.000000e+00 : f32
    %11 = vector.broadcast %cst_7 : f32 to vector<2x8x128xf32>
    %12 = arith.divf %11, %10 : vector<2x8x128xf32>
    %cst_8 = arith.constant 0.000000e+00 : f32
    %13 = vector.broadcast %cst_8 : f32 to vector<2x8x128xf32>
    %14 = arith.cmpf oge, %3, %13 : vector<2x8x128xf32>
    %15 = arith.mulf %8, %12 : vector<2x8x128xf32>
    %16 = arith.select %14, %12, %15 : vector<2x8x128xi1>, vector<2x8x128xf32>
    %cst_9 = arith.constant 0.000000e+00 : f32
    %17 = vector.broadcast %cst_9 : f32 to vector<2x8x128xf32>
    %18 = arith.maximumf %3, %17 : vector<2x8x128xf32>
    %19 = math.log %10 : vector<2x8x128xf32>
    %20 = arith.addf %18, %19 : vector<2x8x128xf32>
    %21 = arith.mulf %3, %4 : vector<2x8x128xf32>
    %22 = arith.subf %20, %21 : vector<2x8x128xf32>
    %c0_10 = arith.constant 0 : index
    %c0_11 = arith.constant 0 : index
    %c0_12 = arith.constant 0 : index
    %23 = vector.load %arg5[%c0_10, %c0_11, %c0_12] : memref<4x16x128xf32, #tpu.memory_space<vmem>>, vector<1x16x128xf32>
    %24 = vector.shape_cast %23 : vector<1x16x128xf32> to vector<16x128xf32>
    %25 = arith.mulf %16, %4 : vector<2x8x128xf32>
    %26 = vector.shape_cast %25 : vector<2x8x128xf32> to vector<2x1x8x128xf32>
    %cst_13 = arith.constant dense<0.000000e+00> : vector<2x8x128xf32>
    %27 = vector.multi_reduction <add>, %26, %cst_13 [1] : vector<2x1x8x128xf32> to vector<2x8x128xf32>
    %28 = vector.shape_cast %27 : vector<2x8x128xf32> to vector<16x128xf32>
    %29 = arith.addf %24, %28 : vector<16x128xf32>
    %c0_14 = arith.constant 0 : index
    %c0_15 = arith.constant 0 : index
    %c0_16 = arith.constant 0 : index
    %30 = vector.load %arg5[%c0_14, %c0_15, %c0_16] : memref<4x16x128xf32, #tpu.memory_space<vmem>>, vector<1x16x128xf32>
    %31 = vector.shape_cast %30 : vector<1x16x128xf32> to vector<16x128xf32>
    %32 = vector.shape_cast %29 : vector<16x128xf32> to vector<1x16x128xf32>
    tpu.vector_store %arg5[%c0_14, %c0_15, %c0_16], %32 {strides = array<i32>} : memref<4x16x128xf32, #tpu.memory_space<vmem>>, vector<1x16x128xf32>,
    %c1 = arith.constant 1 : index
    %c0_17 = arith.constant 0 : index
    %c0_18 = arith.constant 0 : index
    %33 = vector.load %arg5[%c1, %c0_17, %c0_18] : memref<4x16x128xf32, #tpu.memory_space<vmem>>, vector<1x16x128xf32>
    %34 = vector.shape_cast %33 : vector<1x16x128xf32> to vector<16x128xf32>
    %35 = vector.shape_cast %16 : vector<2x8x128xf32> to vector<2x1x8x128xf32>
    %cst_19 = arith.constant dense<0.000000e+00> : vector<2x8x128xf32>
    %36 = vector.multi_reduction <add>, %35, %cst_19 [1] : vector<2x1x8x128xf32> to vector<2x8x128xf32>
    %37 = vector.shape_cast %36 : vector<2x8x128xf32> to vector<16x128xf32>
    %38 = arith.addf %34, %37 : vector<16x128xf32>
    %c1_20 = arith.constant 1 : index
    %c0_21 = arith.constant 0 : index
    %c0_22 = arith.constant 0 : index
    %39 = vector.load %arg5[%c1_20, %c0_21, %c0_22] : memref<4x16x128xf32, #tpu.memory_space<vmem>>, vector<1x16x128xf32>
    %40 = vector.shape_cast %39 : vector<1x16x128xf32> to vector<16x128xf32>
    %41 = vector.shape_cast %38 : vector<16x128xf32> to vector<1x16x128xf32>
    tpu.vector_store %arg5[%c1_20, %c0_21, %c0_22], %41 {strides = array<i32>} : memref<4x16x128xf32, #tpu.memory_space<vmem>>, vector<1x16x128xf32>,
    %c2 = arith.constant 2 : index
    %c0_23 = arith.constant 0 : index
    %c0_24 = arith.constant 0 : index
    %42 = vector.load %arg5[%c2, %c0_23, %c0_24] : memref<4x16x128xf32, #tpu.memory_space<vmem>>, vector<1x16x128xf32>
    %43 = vector.shape_cast %42 : vector<1x16x128xf32> to vector<16x128xf32>
    %44 = vector.shape_cast %4 : vector<2x8x128xf32> to vector<2x1x8x128xf32>
    %cst_25 = arith.constant dense<0.000000e+00> : vector<2x8x128xf32>
    %45 = vector.multi_reduction <add>, %44, %cst_25 [1] : vector<2x1x8x128xf32> to vector<2x8x128xf32>
    %46 = vector.shape_cast %45 : vector<2x8x128xf32> to vector<16x128xf32>
    %47 = arith.addf %43, %46 : vector<16x128xf32>
    %c2_26 = arith.constant 2 : index
    %c0_27 = arith.constant 0 : index
    %c0_28 = arith.constant 0 : index
    %48 = vector.load %arg5[%c2_26, %c0_27, %c0_28] : memref<4x16x128xf32, #tpu.memory_space<vmem>>, vector<1x16x128xf32>
    %49 = vector.shape_cast %48 : vector<1x16x128xf32> to vector<16x128xf32>
    %50 = vector.shape_cast %47 : vector<16x128xf32> to vector<1x16x128xf32>
    tpu.vector_store %arg5[%c2_26, %c0_27, %c0_28], %50 {strides = array<i32>} : memref<4x16x128xf32, #tpu.memory_space<vmem>>, vector<1x16x128xf32>,
    %c3 = arith.constant 3 : index
    %c0_29 = arith.constant 0 : index
    %c0_30 = arith.constant 0 : index
    %51 = vector.load %arg5[%c3, %c0_29, %c0_30] : memref<4x16x128xf32, #tpu.memory_space<vmem>>, vector<1x16x128xf32>
    %52 = vector.shape_cast %51 : vector<1x16x128xf32> to vector<16x128xf32>
    %53 = vector.shape_cast %22 : vector<2x8x128xf32> to vector<2x1x8x128xf32>
    %cst_31 = arith.constant dense<0.000000e+00> : vector<2x8x128xf32>
    %54 = vector.multi_reduction <add>, %53, %cst_31 [1] : vector<2x1x8x128xf32> to vector<2x8x128xf32>
    %55 = vector.shape_cast %54 : vector<2x8x128xf32> to vector<16x128xf32>
    %56 = arith.addf %52, %55 : vector<16x128xf32>
    %c3_32 = arith.constant 3 : index
    %c0_33 = arith.constant 0 : index
    %c0_34 = arith.constant 0 : index
    %57 = vector.load %arg5[%c3_32, %c0_33, %c0_34] : memref<4x16x128xf32, #tpu.memory_space<vmem>>, vector<1x16x128xf32>
    %58 = vector.shape_cast %57 : vector<1x16x128xf32> to vector<16x128xf32>
    %59 = vector.shape_cast %56 : vector<16x128xf32> to vector<1x16x128xf32>
    tpu.vector_store %arg5[%c3_32, %c0_33, %c0_34], %59 {strides = array<i32>} : memref<4x16x128xf32, #tpu.memory_space<vmem>>, vector<1x16x128xf32>,
    %c0_i32_35 = arith.constant 0 : i32
    %60 = arith.cmpi eq, %arg1, %c0_i32_35 : i32
    %61 = arith.extui %60 : i1 to i32
    %c0_i32_36 = arith.constant 0 : i32
    %62 = arith.cmpi ne, %61, %c0_i32_36 : i32
    scf.if %62 {
      %c0_37 = arith.constant 0 : index
      %c0_38 = arith.constant 0 : index
      %c0_39 = arith.constant 0 : index
      %63 = vector.load %arg5[%c0_37, %c0_38, %c0_39] : memref<4x16x128xf32, #tpu.memory_space<vmem>>, vector<4x16x128xf32>
      %c0_40 = arith.constant 0 : index
      %c0_41 = arith.constant 0 : index
      %c0_42 = arith.constant 0 : index
      %c0_43 = arith.constant 0 : index
      %64 = vector.load %arg4[%c0_40, %c0_41, %c0_42, %c0_43] : memref<1x4x16x128xf32, #tpu.memory_space<vmem>>, vector<1x4x16x128xf32>
      %65 = vector.shape_cast %64 : vector<1x4x16x128xf32> to vector<4x16x128xf32>
      %66 = vector.shape_cast %63 : vector<4x16x128xf32> to vector<1x4x16x128xf32>
      tpu.vector_store %arg4[%c0_40, %c0_41, %c0_42, %c0_43], %66 {strides = array<i32>} : memref<1x4x16x128xf32, #tpu.memory_space<vmem>>, vector<1x4x16x128xf32>,
    } else {
    }
    return
  }
  func.func @transform_0(%arg0: i32, %arg1: i32) -> (i32, i32, i32) {
    %c1_i32 = arith.constant 1 : i32
    %0 = arith.muli %arg0, %c1_i32 : i32
    %1 = arith.addi %0, %arg1 : i32
    %c0_i32 = arith.constant 0 : i32
    %c0_i32_0 = arith.constant 0 : i32
    %c0_i32_1 = arith.constant 0 : i32
    return %c0_i32, %1, %c0_i32_0 : i32, i32, i32
  }
  func.func @transform_1(%arg0: i32, %arg1: i32) -> (i32, i32, i32) {
    %c1_i32 = arith.constant 1 : i32
    %0 = arith.muli %arg0, %c1_i32 : i32
    %1 = arith.addi %0, %arg1 : i32
    %c0_i32 = arith.constant 0 : i32
    %c0_i32_0 = arith.constant 0 : i32
    %c0_i32_1 = arith.constant 0 : i32
    return %c0_i32, %1, %c0_i32_0 : i32, i32, i32
  }
  func.func @transform_2(%arg0: i32, %arg1: i32) -> (i32, i32, i32, i32) {
    %c0_i32 = arith.constant 0 : i32
    %c0_i32_0 = arith.constant 0 : i32
    %c0_i32_1 = arith.constant 0 : i32
    %c0_i32_2 = arith.constant 0 : i32
    return %arg0, %c0_i32, %c0_i32_0, %c0_i32_1 : i32, i32, i32, i32
  }
}

</mosaic_0001>

<bundles_post_ra>
// kernel: tpu_custom_call.1
= control target key start
LH: loop header
LB: loop body
LE: loop exit
PB: predicated region body
PF: predicated region fallthrough
CT: control target
= control target key end

     0   :  { %7 = vsyncpa [#allocation4], 0  ;;  %s324_s0 = inlined_call_operand.hbm [shape: f32[2,8,128], index: 0, kind: input, shape index: {}]   ;;  %s325_s1 = inlined_call_operand.hbm [shape: f32[2,8,128], index: 1, kind: input, shape index: {}]   ;;  %s326_s2 = inlined_call_operand.hbm [shape: f32[1,4,16,128], index: 2, kind: output, shape index: {}]  }
   0x1   :  { %8 = vsyncpa [#allocation7], 0 }
   0x2   :  { %9 = vsyncpa [#allocation5], 0  ;;  %s259_s9 = smov [#allocation3]   ;;  %s187_s13 = scalar_lea.hbm %s324_s0, 256 }
   0x3   :  { %s18_s10 = sshll.u32 %s259_s9, 4  ;;  %p188_p0 = scmp.ne.s32.totalorder %s324_s0, %s187_s13  ;;  %s19_s10 = int_to_ptr.vmem [resolvable:$true] %s18_s10 }
   0x4   :  { %p191_p1 = scmp.lt.u32.totalorder %s187_s13, %s324_s0 }
   0x6   :  { %p193_p2 = pnand %p191_p1, %p188_p0 }
   0x8   :  { %196 = shalt.err (!%p193_p2)
}
   0x9   :  { %s197_s18 = scalar_lea.vmem %s19_s10, 256  ;;  %p202_p4 = scmp.lt.s32.totalorder %s19_s10, %s19_s10 }
   0xa   :  { %p198_p3 = scmp.ne.s32.totalorder %s19_s10, %s197_s18  ;;  %p203_p5 = scmp.lt.s32.totalorder %s197_s18, %s197_s18 }
   0xc   :  { %p204_p6 = por %p203_p5, %p202_p4 }
   0xe   :  { %p205_p7 = pnand %p204_p6, %p198_p3 }
  0x10   :  { %208 = shalt.err (!%p205_p7)
}
  0x11   :  { %s260_s19 = smov 128   ;;  %s261_s20 = smov 8  }
  0x12   :  { %24 = dma.hbm_to_vmem [thread:$0]  %s324_s0, 256, %s19_s10, [#allocation4], %s260_s19, %s260_s19, %s261_s20  }
  0x13   :  { %s262_s23 = smov [#allocation6]   ;;  %s209_s27 = scalar_lea.hbm %s325_s1, 256 }
  0x14   :  { %s33_s24 = sshll.u32 %s262_s23, 4  ;;  %p210_p8 = scmp.ne.s32.totalorder %s325_s1, %s209_s27  ;;  %s34_s24 = int_to_ptr.vmem [resolvable:$true] %s33_s24 }
  0x15   :  { %p213_p9 = scmp.lt.u32.totalorder %s209_s27, %s325_s1 }
  0x17   :  { %p215_p10 = pnand %p213_p9, %p210_p8 }
  0x19   :  { %218 = shalt.err (!%p215_p10)
}
  0x1a   :  { %s219_s4 = scalar_lea.vmem %s34_s24, 256  ;;  %p224_p12 = scmp.lt.s32.totalorder %s34_s24, %s34_s24 }
  0x1b   :  { %p220_p11 = scmp.ne.s32.totalorder %s34_s24, %s219_s4  ;;  %p225_p13 = scmp.lt.s32.totalorder %s219_s4, %s219_s4 }
  0x1d   :  { %p226_p0 = por %p225_p13, %p224_p12 }
  0x1f   :  { %p227_p1 = pnand %p226_p0, %p220_p11 }
  0x21   :  { %230 = shalt.err (!%p227_p1)
}
  0x22   :  { %39 = dma.hbm_to_vmem [thread:$0]  %s325_s1, 256, %s34_s24, [#allocation7], %s260_s19, %s260_s19, %s261_s20  }
  0x23   :  { %253 = dma.done.wait [#allocation4], 256  }
  0x24   :  { %254 = vsyncadd [#allocation4], 4294967040 }
  0x25   :  { %255 = dma.done.wait [#allocation7], 256  }
  0x26   :  { %256 = vsyncadd [#allocation7], 4294967040  ;;  %v60_v0 = vld [vmem:[#allocation3] sm:$0xff]  ;;  %v62_v1 = vld [vmem:[#allocation6] sm:$0xff]  ;;  %s263_s1 = smov [#allocation8]  }
  0x27   :  { %v61_v2 = vld [vmem:[#allocation3 + $0x8] sm:$0xff]  ;;  %v64_v3 = vand.u32 2147483647, %v60_v0  ;;  %148 = vst [vmem:[#allocation8 + $0x20] sm:$0xff] %v62_v1  ;;  %v63_v4 = vld [vmem:[#allocation6 + $0x8] sm:$0xff]  ;;  %vm78_vm0 = vcmp.ge.f32.partialorder %v60_v0, 0.0  ;;  %v92_v24 = vmul.f32 %v62_v1, %v60_v0 }
  0x28   :  { %v65_v5 = vand.u32 2147483647, %v61_v2  ;;  %149 = vst [vmem:[#allocation8 + $0x28] sm:$0xff] %v63_v4  ;;  %vm79_vm1 = vcmp.ge.f32.partialorder %v61_v2, 0.0  ;;  %v84_v17 = vmax.f32 %v60_v0, 0.0  ;;  %v85_v20 = vmax.f32 %v61_v2, 0.0 }
  0x29   :  { %v66_v6 = vsub.f32 0.0, %v64_v3  ;;  %v93_v28 = vmul.f32 %v63_v4, %v61_v2  ;;  %s157_s6 = sshll.u32 %s263_s1, 4  ;;  %s158_s6 = int_to_ptr.vmem [resolvable:$true] %s157_s6 }
  0x2a   :  { %v67_v7 = vsub.f32 0.0, %v65_v5  ;;  %s231_s7 = scalar_lea.vmem %s158_s6, 1024  ;;  %p236_p3 = scmp.lt.s32.totalorder %s158_s6, %s158_s6 }
  0x2b   :  { %v68_v8 = vmul.f32 1.442695, %v66_v6  ;;  %p232_p2 = scmp.ne.s32.totalorder %s158_s6, %s231_s7  ;;  %p237_p4 = scmp.lt.s32.totalorder %s231_s7, %s231_s7 }
  0x2c   :  { %v70_v9 = vmul.f32 1.442695, %v67_v7 }
  0x2d   :  { %175 = vpow2.f32 %v68_v8  ;;  %p238_p5 = por %p237_p4, %p236_p3 }
  0x2e   :  { %177 = vpow2.f32 %v70_v9 }
  0x2f   :  { %p239_p6 = pnand %p238_p5, %p232_p2 }
  0x37   :  { %v176_v10 = vpop.eup %175 }
  0x38   :  { %v178_v11 = vpop.eup %177  ;;  %v72_v12 = vadd.f32 1.0, %v176_v10 }
  0x39   :  { %v73_v13 = vadd.f32 1.0, %v178_v11 }
  0x3a   :  { %179 = vrcp.f32 %v72_v12 }
  0x3b   :  { %181 = vrcp.f32 %v73_v13 }
  0x3c   :  { %183 = vlog2.f32 %v72_v12 }
  0x3d   :  { %185 = vlog2.f32 %v73_v13 }
  0x44   :  { %v180_v14 = vpop.eup %179 }
  0x45   :  { %v182_v15 = vpop.eup %181  ;;  %v80_v16 = vmul.f32 %v180_v14, %v176_v10 }
  0x46   :  { %v184_v18 = vpop.eup %183  ;;  %v81_v19 = vmul.f32 %v182_v15, %v178_v11 }
  0x47   :  { %v186_v21 = vpop.eup %185  ;;  %v82_v22 = vsel %vm78_vm0, %v180_v14, %v80_v16  ;;  %v87_v23 = vmul.f32 0.6931472, %v184_v18 }
  0x48   :  { %v98_v25 = vmul.f32 %v82_v22, %v62_v1  ;;  %146 = vst [vmem:[#allocation8 + $0x10] sm:$0xff] %v82_v22  ;;  %v83_v26 = vsel %vm79_vm1, %v182_v15, %v81_v19  ;;  %v89_v27 = vmul.f32 0.6931472, %v186_v21 }
  0x49   :  { %v99_v29 = vmul.f32 %v83_v26, %v63_v4  ;;  %147 = vst [vmem:[#allocation8 + $0x18] sm:$0xff] %v83_v26  ;;  %v90_v30 = vadd.f32 %v87_v23, %v84_v17 }
  0x4a   :  { %144 = vst [vmem:[#allocation8] sm:$0xff] %v98_v25  ;;  %v91_v31 = vadd.f32 %v89_v27, %v85_v20 }
  0x4b   :  { %145 = vst [vmem:[#allocation8 + $0x8] sm:$0xff] %v99_v29  ;;  %v94_v32 = vsub.f32 %v90_v30, %v92_v24 }
  0x4c   :  { %v95_v33 = vsub.f32 %v91_v31, %v93_v28 }
  0x4d   :  { %150 = vst [vmem:[#allocation8 + $0x30] sm:$0xff] %v94_v32 }
  0x4e   :  { %151 = vst [vmem:[#allocation8 + $0x38] sm:$0xff] %v95_v33 }
  0x4f   :  { %242 = shalt.err (!%p239_p6)
}
  0x50   :  { %s243_s10 = scalar_lea.hbm %s326_s2, 1024 }
  0x51   :  { %p244_p7 = scmp.ne.s32.totalorder %s326_s2, %s243_s10  ;;  %p247_p8 = scmp.lt.u32.totalorder %s243_s10, %s326_s2 }
  0x53   :  { %p249_p9 = pnand %p247_p8, %p244_p7 }
  0x55   :  { %252 = shalt.err (!%p249_p9)
}
  0x56   :  { %163 = dma.vmem_to_hbm [thread:$0]  %s158_s6, 1024, %s326_s2, [#allocation5], %s260_s19, %s260_s19, %s261_s20  }
  0x57   :  { %257 = dma.done.wait [#allocation5], 1024  }
  0x58   :  { %258 = vsyncadd [#allocation5], 4294966272 }
  0x59   :  { %167 = vsyncpa [#allocation4], 1 }
  0x5a   :  { %168 = vsyncpa [#allocation7], 1 }
  0x5b   :  { %169 = vsyncpa [#allocation5], 1 }

</bundles_post_ra>
